<compile_context>
chip_gen: v7x
topology: tpu7x:2x2x1
jax: 0.10.0
libtpu: 0.0.40
codegen_flags: <defaults>
</compile_context>

<pallas_src>
import functools

import jax
import jax.numpy as jnp
from jax import lax
from jax.experimental import pallas as pl
from jax.experimental.pallas import tpu as pltpu


def _round_up(x, m):
    return (x + m - 1) // m * m


def double_conv_kernel(x_ref, w1_ref, b1_ref, g1_ref, be1_ref,
                       w2_ref, b2_ref, g2_ref, be2_ref, o_ref,
                       *, L, k, bt, c_out_real):
    pad = (k - 1) // 2
    rows = bt * L
    cpi = x_ref.shape[-1]            # lane-padded input channels
    cpo = o_ref.shape[-1]            # lane-padded output channels
    inv_c = jnp.float32(1.0 / c_out_real)
    eps = jnp.float32(1e-5)
    inv_sqrt2 = jnp.float32(0.7071067811865476)

    def local_l(c):
        # per-row index l within its own batch element, shape (rows, c)
        if bt == 1:
            return lax.broadcasted_iota(jnp.int32, (rows, c), 0)
        # bt > 1 only when L % 8 == 0, so this collapse is layout-free
        return lax.broadcasted_iota(jnp.int32, (bt, L, c), 1).reshape(rows, c)

    def im2col(a2, c):
        # a2: (rows, c)  ->  (rows, k*c).  Tap t needs a2 shifted so row l sees
        # source row (l + t - pad); done with a circular sublane roll on the XLU
        # plus a mask that zeroes rows whose source lies outside [0, L) of the
        # same batch element (this also kills wraparound / cross-batch rows).
        l_idx = local_l(c)
        taps = []
        for t in range(k):
            s = pad - t
            if s == 0:
                taps.append(a2)
            else:
                rolled = pltpu.roll(a2, shift=s % rows, axis=0)
                valid = jnp.logical_and(l_idx >= s, l_idx < L + s)
                taps.append(jnp.where(valid, rolled, 0.0))
        return jnp.concatenate(taps, axis=-1)

    def gelu(v):
        # exact erf GELU (PyTorch nn.GELU default)
        return 0.5 * v * (1.0 + lax.erf(v * inv_sqrt2))

    def layernorm(v, g, b):
        # channels on lanes; padded lanes of v are exactly zero, so the full-lane
        # sum equals the sum over the real channels.  Variance is masked to the
        # real channels.  gamma/beta are zero on padded lanes, so the result's
        # padded lanes stay exactly zero (needed by the next conv / final slice).
        lane = lax.broadcasted_iota(jnp.int32, v.shape, 1)
        mu = jnp.sum(v, axis=-1, keepdims=True) * inv_c
        d = v - mu
        var = jnp.sum(jnp.where(lane < c_out_real, d * d, 0.0),
                      axis=-1, keepdims=True) * inv_c
        return d * lax.rsqrt(var + eps) * g + b

    x = x_ref[...].reshape(rows, cpi)                       # (rows, cpi)

    # ---- Conv1d #1 : one fused matmul, contraction depth k*cpi ----
    y = jnp.dot(im2col(x, cpi), w1_ref[...],
                preferred_element_type=jnp.float32) + b1_ref[...]
    y = layernorm(gelu(y), g1_ref[...], be1_ref[...])

    # ---- Conv1d #2 : one fused matmul, contraction depth k*cpo ----
    z = jnp.dot(im2col(y, cpo), w2_ref[...],
                preferred_element_type=jnp.float32) + b2_ref[...]
    z = layernorm(gelu(z), g2_ref[...], be2_ref[...])

    o_ref[...] = z.reshape(bt, L, cpo).astype(o_ref.dtype)  # lane-dense store


def double_conv(x_ncl, params, *, kernel_size, lane=128, target_rows=512):
    """x_ncl: (B, C_in, L) float32  ->  (B, C_out, L) float32."""
    w1, b1, g1, be1, w2, b2, g2, be2 = params
    B, C_in, L = x_ncl.shape
    C_out = w1.shape[0]
    k = kernel_size
    # TODO(synk): even kernel_size needs PyTorch's asymmetric 'same' padding.
    assert k % 2 == 1, "padding='same' parity only implemented for odd kernel_size"

    Cpi = _round_up(C_in, lane)
    Cpo = _round_up(C_out, lane)

    # Batch-tile: amortize per-grid-step overhead.  bt > 1 only when L % 8 == 0
    # so in-kernel (bt, L, C) <-> (bt*L, C) collapses are layout-free.
    bt = 1
    if L % 8 == 0:
        for cand in range(1, B + 1):
            if B % cand == 0 and cand * L <= max(L, target_rows):
                bt = cand
    nb = B // bt

    # NCL -> NLC, lane-pad channels with zeros.
    x_nlc = jnp.transpose(x_ncl, (0, 2, 1)).astype(jnp.float32)
    x_pad = jnp.pad(x_nlc, ((0, 0), (0, 0), (0, Cpi - C_in)))

    # PyTorch Conv1d weight (C_out, C_in, k) -> fused (k*Cp_in, Cp_out):
    # row t*Cp_in + ci holds w[co, ci, t]; padded rows/cols are zero.
    def fuse_w(w, c_in_real, cpi_pad):
        wt = jnp.transpose(w, (2, 1, 0)).astype(jnp.float32)   # (k, c_in, C_out)
        wt = jnp.pad(wt, ((0, 0), (0, cpi_pad - c_in_real), (0, Cpo - C_out)))
        return wt.reshape(k * cpi_pad, Cpo)

    w1_f = fuse_w(w1, C_in, Cpi)
    w2_f = fuse_w(w2, C_out, Cpo)

    pad_vec = lambda v: jnp.pad(v.astype(jnp.float32), (0, Cpo - C_out)).reshape(1, Cpo)
    b1_p, g1_p, be1_p = pad_vec(b1), pad_vec(g1), pad_vec(be1)
    b2_p, g2_p, be2_p = pad_vec(b2), pad_vec(g2), pad_vec(be2)

    full2 = lambda i: (0, 0)

    kernel = functools.partial(double_conv_kernel, L=L, k=k, bt=bt,
                               c_out_real=C_out)

    out_p = pl.pallas_call(
        kernel,
        out_shape=jax.ShapeDtypeStruct((B, L, Cpo), jnp.float32),
        grid_spec=pltpu.PrefetchScalarGridSpec(
            num_scalar_prefetch=0,
            grid=(nb,),
            in_specs=[
                pl.BlockSpec((bt, L, Cpi), lambda i: (i, 0, 0)),   # x (lane-padded)
                pl.BlockSpec((k * Cpi, Cpo), full2),               # w1 fused
                pl.BlockSpec((1, Cpo), full2),                     # b1
                pl.BlockSpec((1, Cpo), full2),                     # ln1 gamma
                pl.BlockSpec((1, Cpo), full2),                     # ln1 beta
                pl.BlockSpec((k * Cpo, Cpo), full2),               # w2 fused
                pl.BlockSpec((1, Cpo), full2),                     # b2
                pl.BlockSpec((1, Cpo), full2),                     # ln2 gamma
                pl.BlockSpec((1, Cpo), full2),                     # ln2 beta
            ],
            out_specs=pl.BlockSpec((bt, L, Cpo), lambda i: (i, 0, 0)),
        ),
        compiler_params=pltpu.CompilerParams(
            dimension_semantics=("parallel",)),
    )(x_pad, w1_f, b1_p, g1_p, be1_p, w2_f, b2_p, g2_p, be2_p)

    out = out_p[:, :, :C_out]                 # drop channel padding
    return jnp.transpose(out, (0, 2, 1))      # NLC -> NCL


# --------------------------- pure-JAX reference ---------------------------
def double_conv_ref(x_ncl, params, *, kernel_size):
    w1, b1, g1, be1, w2, b2, g2, be2 = params

    def conv1d_same(x, w, b):
        out = lax.conv_general_dilated(
            x, w, window_strides=(1,), padding="SAME",
            dimension_numbers=("NCH", "OIH", "NCH"))
        return out + b[None, :, None]

    def norm(x, g, be, eps=1e-5):
        xt = jnp.transpose(x, (0, 2, 1))
        mu = jnp.mean(xt, axis=-1, keepdims=True)
        var = jnp.mean((xt - mu) ** 2, axis=-1, keepdims=True)
        xt = (xt - mu) / jnp.sqrt(var + eps) * g + be
        return jnp.transpose(xt, (0, 2, 1))

    y = conv1d_same(x_ncl, w1, b1)
    y = jax.nn.gelu(y, approximate=False)
    y = norm(y, g1, be1)
    y = conv1d_same(y, w2, b2)
    y = jax.nn.gelu(y, approximate=False)
    y = norm(y, g2, be2)
    return y


if __name__ == "__main__":
    B, C_in, C_out, L, K = 2, 4, 32, 16, 3

    key = jax.random.PRNGKey(0)
    ks = jax.random.split(key, 9)
    scale1 = 1.0 / jnp.sqrt(C_in * K)
    scale2 = 1.0 / jnp.sqrt(C_out * K)
    w1 = jax.random.uniform(ks[0], (C_out, C_in, K), jnp.float32, -scale1, scale1)
    b1 = jax.random.uniform(ks[1], (C_out,), jnp.float32, -scale1, scale1)
    w2 = jax.random.uniform(ks[2], (C_out, C_out, K), jnp.float32, -scale2, scale2)
    b2 = jax.random.uniform(ks[3], (C_out,), jnp.float32, -scale2, scale2)
    g1 = 1.0 + 0.1 * jax.random.normal(ks[4], (C_out,), jnp.float32)
    be1 = 0.1 * jax.random.normal(ks[5], (C_out,), jnp.float32)
    g2 = 1.0 + 0.1 * jax.random.normal(ks[6], (C_out,), jnp.float32)
    be2 = 0.1 * jax.random.normal(ks[7], (C_out,), jnp.float32)
    params = (w1, b1, g1, be1, w2, b2, g2, be2)

    x = jax.random.normal(ks[8], (B, C_in, L), jnp.float32)

    out = double_conv(x, params, kernel_size=K)
    out = jax.block_until_ready(out)

    ref = jax.block_until_ready(double_conv_ref(x, params, kernel_size=K))
    assert out.shape == (B, C_out, L)
    assert jnp.allclose(out, ref, atol=1e-4, rtol=1e-4), float(jnp.max(jnp.abs(out - ref)))

    print("KERNEL_OK")
</pallas_src>

<mosaic_0001>
module attributes {stable_mosaic.version = 11 : i64} {
  func.func @double_conv_kernel(%arg0: i32, %arg1: memref<2x16x128xf32, #tpu.memory_space<vmem>>, %arg2: memref<384x128xf32, #tpu.memory_space<vmem>>, %arg3: memref<1x128xf32, #tpu.memory_space<vmem>>, %arg4: memref<1x128xf32, #tpu.memory_space<vmem>>, %arg5: memref<1x128xf32, #tpu.memory_space<vmem>>, %arg6: memref<384x128xf32, #tpu.memory_space<vmem>>, %arg7: memref<1x128xf32, #tpu.memory_space<vmem>>, %arg8: memref<1x128xf32, #tpu.memory_space<vmem>>, %arg9: memref<1x128xf32, #tpu.memory_space<vmem>>, %arg10: memref<2x16x128xf32, #tpu.memory_space<vmem>>) attributes {dimension_semantics = [#tpu.dimension_semantics<parallel>], iteration_bounds = array<i64: 1>, scalar_prefetch = 0 : i64, scratch_operands = 0 : i64, tpu.core_type = #tpu.core_type<tc>, window_params = [{transform_indices = @transform_0, window_bounds = array<i64: 2, 16, 128>}, {pipeline_mode = #tpu.pipeline_mode<synchronous>, transform_indices = @transform_1, window_bounds = array<i64: 384, 128>}, {pipeline_mode = #tpu.pipeline_mode<synchronous>, transform_indices = @transform_2, window_bounds = array<i64: 1, 128>}, {pipeline_mode = #tpu.pipeline_mode<synchronous>, transform_indices = @transform_3, window_bounds = array<i64: 1, 128>}, {pipeline_mode = #tpu.pipeline_mode<synchronous>, transform_indices = @transform_4, window_bounds = array<i64: 1, 128>}, {pipeline_mode = #tpu.pipeline_mode<synchronous>, transform_indices = @transform_5, window_bounds = array<i64: 384, 128>}, {pipeline_mode = #tpu.pipeline_mode<synchronous>, transform_indices = @transform_6, window_bounds = array<i64: 1, 128>}, {pipeline_mode = #tpu.pipeline_mode<synchronous>, transform_indices = @transform_7, window_bounds = array<i64: 1, 128>}, {pipeline_mode = #tpu.pipeline_mode<synchronous>, transform_indices = @transform_8, window_bounds = array<i64: 1, 128>}, {transform_indices = @transform_9, window_bounds = array<i64: 2, 16, 128>}]} {
    %c0 = arith.constant 0 : index
    %c0_0 = arith.constant 0 : index
    %c0_1 = arith.constant 0 : index
    %0 = vector.load %arg1[%c0, %c0_0, %c0_1] : memref<2x16x128xf32, #tpu.memory_space<vmem>>, vector<2x16x128xf32>
    %1 = vector.shape_cast %0 : vector<2x16x128xf32> to vector<32x128xf32>
    %2 = tpu.iota {dimensions = array<i32: 1>} : vector<2x16x128xi32>
    %3 = vector.shape_cast %2 : vector<2x16x128xi32> to vector<32x128xi32>
    %c1_i32 = arith.constant 1 : i32
    %4 = tpu.dynamic_rotate %1 by %c1_i32 dim 0 : vector<32x128xf32>, i32 -> vector<32x128xf32>
    %c1_i32_2 = arith.constant 1 : i32
    %5 = vector.broadcast %c1_i32_2 : i32 to vector<32x128xi32>
    %6 = arith.cmpi sge, %3, %5 : vector<32x128xi32>
    %c17_i32 = arith.constant 17 : i32
    %7 = vector.broadcast %c17_i32 : i32 to vector<32x128xi32>
    %8 = arith.cmpi slt, %3, %7 : vector<32x128xi32>
    %9 = arith.andi %6, %8 : vector<32x128xi1>
    %cst = arith.constant 0.000000e+00 : f32
    %10 = vector.broadcast %cst : f32 to vector<32x128xf32>
    %11 = arith.select %9, %4, %10 : vector<32x128xi1>, vector<32x128xf32>
    %c31_i32 = arith.constant 31 : i32
    %12 = tpu.dynamic_rotate %1 by %c31_i32 dim 0 : vector<32x128xf32>, i32 -> vector<32x128xf32>
    %c-1_i32 = arith.constant -1 : i32
    %13 = vector.broadcast %c-1_i32 : i32 to vector<32x128xi32>
    %14 = arith.cmpi sge, %3, %13 : vector<32x128xi32>
    %c15_i32 = arith.constant 15 : i32
    %15 = vector.broadcast %c15_i32 : i32 to vector<32x128xi32>
    %16 = arith.cmpi slt, %3, %15 : vector<32x128xi32>
    %17 = arith.andi %14, %16 : vector<32x128xi1>
    %cst_3 = arith.constant 0.000000e+00 : f32
    %18 = vector.broadcast %cst_3 : f32 to vector<32x128xf32>
    %19 = arith.select %17, %12, %18 : vector<32x128xi1>, vector<32x128xf32>
    %20 = tpu.concatenate %11, %1, %19 in 1 : vector<32x128xf32>, vector<32x128xf32>, vector<32x128xf32> -> vector<32x384xf32>
    %c0_4 = arith.constant 0 : index
    %c0_5 = arith.constant 0 : index
    %21 = vector.load %arg2[%c0_4, %c0_5] : memref<384x128xf32, #tpu.memory_space<vmem>>, vector<384x128xf32>
    %cst_6 = arith.constant dense<0.000000e+00> : vector<32x128xf32>
    %22 = tpu.matmul %20, %21, %cst_6 {dimension_numbers = #tpu.dot_dimension_numbers<[1], [0], [0], [1], [0, 0, 1, 1], [], []>} : vector<32x384xf32>, vector<384x128xf32>, vector<32x128xf32> -> vector<32x128xf32>
    %c0_7 = arith.constant 0 : index
    %c0_8 = arith.constant 0 : index
    %23 = vector.load %arg3[%c0_7, %c0_8] : memref<1x128xf32, #tpu.memory_space<vmem>>, vector<1x128xf32>
    %24 = vector.broadcast %23 : vector<1x128xf32> to vector<32x128xf32>
    %25 = arith.addf %22, %24 : vector<32x128xf32>
    %cst_9 = arith.constant 5.000000e-01 : f32
    %26 = vector.broadcast %cst_9 : f32 to vector<32x128xf32>
    %27 = arith.mulf %26, %25 : vector<32x128xf32>
    %cst_10 = arith.constant 0.707106769 : f32
    %28 = vector.broadcast %cst_10 : f32 to vector<32x128xf32>
    %29 = arith.mulf %25, %28 : vector<32x128xf32>
    %30 = math.erf %29 : vector<32x128xf32>
    %cst_11 = arith.constant 1.000000e+00 : f32
    %31 = vector.broadcast %cst_11 : f32 to vector<32x128xf32>
    %32 = arith.addf %31, %30 : vector<32x128xf32>
    %33 = arith.mulf %27, %32 : vector<32x128xf32>
    %c0_12 = arith.constant 0 : index
    %c0_13 = arith.constant 0 : index
    %34 = vector.load %arg4[%c0_12, %c0_13] : memref<1x128xf32, #tpu.memory_space<vmem>>, vector<1x128xf32>
    %c0_14 = arith.constant 0 : index
    %c0_15 = arith.constant 0 : index
    %35 = vector.load %arg5[%c0_14, %c0_15] : memref<1x128xf32, #tpu.memory_space<vmem>>, vector<1x128xf32>
    %36 = tpu.iota {dimensions = array<i32: 1>} : vector<32x128xi32>
    %cst_16 = arith.constant dense<0.000000e+00> : vector<32xf32>
    %37 = vector.multi_reduction <add>, %33, %cst_16 [1] : vector<32x128xf32> to vector<32xf32>
    %38 = vector.shape_cast %37 : vector<32xf32> to vector<32x1xf32>
    %cst_17 = arith.constant 3.125000e-02 : f32
    %39 = vector.broadcast %cst_17 : f32 to vector<32x1xf32>
    %40 = arith.mulf %38, %39 : vector<32x1xf32>
    %41 = vector.broadcast %40 : vector<32x1xf32> to vector<32x128xf32>
    %42 = arith.subf %33, %41 : vector<32x128xf32>
    %c32_i32 = arith.constant 32 : i32
    %43 = vector.broadcast %c32_i32 : i32 to vector<32x128xi32>
    %44 = arith.cmpi slt, %36, %43 : vector<32x128xi32>
    %45 = arith.mulf %42, %42 : vector<32x128xf32>
    %cst_18 = arith.constant 0.000000e+00 : f32
    %46 = vector.broadcast %cst_18 : f32 to vector<32x128xf32>
    %47 = arith.select %44, %45, %46 : vector<32x128xi1>, vector<32x128xf32>
    %cst_19 = arith.constant dense<0.000000e+00> : vector<32xf32>
    %48 = vector.multi_reduction <add>, %47, %cst_19 [1] : vector<32x128xf32> to vector<32xf32>
    %49 = vector.shape_cast %48 : vector<32xf32> to vector<32x1xf32>
    %cst_20 = arith.constant 3.125000e-02 : f32
    %50 = vector.broadcast %cst_20 : f32 to vector<32x1xf32>
    %51 = arith.mulf %49, %50 : vector<32x1xf32>
    %cst_21 = arith.constant 9.99999974E-6 : f32
    %52 = vector.broadcast %cst_21 : f32 to vector<32x1xf32>
    %53 = arith.addf %51, %52 : vector<32x1xf32>
    %54 = math.rsqrt %53 : vector<32x1xf32>
    %55 = vector.broadcast %54 : vector<32x1xf32> to vector<32x128xf32>
    %56 = arith.mulf %42, %55 : vector<32x128xf32>
    %57 = vector.broadcast %34 : vector<1x128xf32> to vector<32x128xf32>
    %58 = arith.mulf %56, %57 : vector<32x128xf32>
    %59 = vector.broadcast %35 : vector<1x128xf32> to vector<32x128xf32>
    %60 = arith.addf %58, %59 : vector<32x128xf32>
    %61 = tpu.iota {dimensions = array<i32: 1>} : vector<2x16x128xi32>
    %62 = vector.shape_cast %61 : vector<2x16x128xi32> to vector<32x128xi32>
    %c1_i32_22 = arith.constant 1 : i32
    %63 = tpu.dynamic_rotate %60 by %c1_i32_22 dim 0 : vector<32x128xf32>, i32 -> vector<32x128xf32>
    %c1_i32_23 = arith.constant 1 : i32
    %64 = vector.broadcast %c1_i32_23 : i32 to vector<32x128xi32>
    %65 = arith.cmpi sge, %62, %64 : vector<32x128xi32>
    %c17_i32_24 = arith.constant 17 : i32
    %66 = vector.broadcast %c17_i32_24 : i32 to vector<32x128xi32>
    %67 = arith.cmpi slt, %62, %66 : vector<32x128xi32>
    %68 = arith.andi %65, %67 : vector<32x128xi1>
    %cst_25 = arith.constant 0.000000e+00 : f32
    %69 = vector.broadcast %cst_25 : f32 to vector<32x128xf32>
    %70 = arith.select %68, %63, %69 : vector<32x128xi1>, vector<32x128xf32>
    %c31_i32_26 = arith.constant 31 : i32
    %71 = tpu.dynamic_rotate %60 by %c31_i32_26 dim 0 : vector<32x128xf32>, i32 -> vector<32x128xf32>
    %c-1_i32_27 = arith.constant -1 : i32
    %72 = vector.broadcast %c-1_i32_27 : i32 to vector<32x128xi32>
    %73 = arith.cmpi sge, %62, %72 : vector<32x128xi32>
    %c15_i32_28 = arith.constant 15 : i32
    %74 = vector.broadcast %c15_i32_28 : i32 to vector<32x128xi32>
    %75 = arith.cmpi slt, %62, %74 : vector<32x128xi32>
    %76 = arith.andi %73, %75 : vector<32x128xi1>
    %cst_29 = arith.constant 0.000000e+00 : f32
    %77 = vector.broadcast %cst_29 : f32 to vector<32x128xf32>
    %78 = arith.select %76, %71, %77 : vector<32x128xi1>, vector<32x128xf32>
    %79 = tpu.concatenate %70, %60, %78 in 1 : vector<32x128xf32>, vector<32x128xf32>, vector<32x128xf32> -> vector<32x384xf32>
    %c0_30 = arith.constant 0 : index
    %c0_31 = arith.constant 0 : index
    %80 = vector.load %arg6[%c0_30, %c0_31] : memref<384x128xf32, #tpu.memory_space<vmem>>, vector<384x128xf32>
    %cst_32 = arith.constant dense<0.000000e+00> : vector<32x128xf32>
    %81 = tpu.matmul %79, %80, %cst_32 {dimension_numbers = #tpu.dot_dimension_numbers<[1], [0], [0], [1], [0, 0, 1, 1], [], []>} : vector<32x384xf32>, vector<384x128xf32>, vector<32x128xf32> -> vector<32x128xf32>
    %c0_33 = arith.constant 0 : index
    %c0_34 = arith.constant 0 : index
    %82 = vector.load %arg7[%c0_33, %c0_34] : memref<1x128xf32, #tpu.memory_space<vmem>>, vector<1x128xf32>
    %83 = vector.broadcast %82 : vector<1x128xf32> to vector<32x128xf32>
    %84 = arith.addf %81, %83 : vector<32x128xf32>
    %cst_35 = arith.constant 5.000000e-01 : f32
    %85 = vector.broadcast %cst_35 : f32 to vector<32x128xf32>
    %86 = arith.mulf %85, %84 : vector<32x128xf32>
    %cst_36 = arith.constant 0.707106769 : f32
    %87 = vector.broadcast %cst_36 : f32 to vector<32x128xf32>
    %88 = arith.mulf %84, %87 : vector<32x128xf32>
    %89 = math.erf %88 : vector<32x128xf32>
    %cst_37 = arith.constant 1.000000e+00 : f32
    %90 = vector.broadcast %cst_37 : f32 to vector<32x128xf32>
    %91 = arith.addf %90, %89 : vector<32x128xf32>
    %92 = arith.mulf %86, %91 : vector<32x128xf32>
    %c0_38 = arith.constant 0 : index
    %c0_39 = arith.constant 0 : index
    %93 = vector.load %arg8[%c0_38, %c0_39] : memref<1x128xf32, #tpu.memory_space<vmem>>, vector<1x128xf32>
    %c0_40 = arith.constant 0 : index
    %c0_41 = arith.constant 0 : index
    %94 = vector.load %arg9[%c0_40, %c0_41] : memref<1x128xf32, #tpu.memory_space<vmem>>, vector<1x128xf32>
    %95 = tpu.iota {dimensions = array<i32: 1>} : vector<32x128xi32>
    %cst_42 = arith.constant dense<0.000000e+00> : vector<32xf32>
    %96 = vector.multi_reduction <add>, %92, %cst_42 [1] : vector<32x128xf32> to vector<32xf32>
    %97 = vector.shape_cast %96 : vector<32xf32> to vector<32x1xf32>
    %cst_43 = arith.constant 3.125000e-02 : f32
    %98 = vector.broadcast %cst_43 : f32 to vector<32x1xf32>
    %99 = arith.mulf %97, %98 : vector<32x1xf32>
    %100 = vector.broadcast %99 : vector<32x1xf32> to vector<32x128xf32>
    %101 = arith.subf %92, %100 : vector<32x128xf32>
    %c32_i32_44 = arith.constant 32 : i32
    %102 = vector.broadcast %c32_i32_44 : i32 to vector<32x128xi32>
    %103 = arith.cmpi slt, %95, %102 : vector<32x128xi32>
    %104 = arith.mulf %101, %101 : vector<32x128xf32>
    %cst_45 = arith.constant 0.000000e+00 : f32
    %105 = vector.broadcast %cst_45 : f32 to vector<32x128xf32>
    %106 = arith.select %103, %104, %105 : vector<32x128xi1>, vector<32x128xf32>
    %cst_46 = arith.constant dense<0.000000e+00> : vector<32xf32>
    %107 = vector.multi_reduction <add>, %106, %cst_46 [1] : vector<32x128xf32> to vector<32xf32>
    %108 = vector.shape_cast %107 : vector<32xf32> to vector<32x1xf32>
    %cst_47 = arith.constant 3.125000e-02 : f32
    %109 = vector.broadcast %cst_47 : f32 to vector<32x1xf32>
    %110 = arith.mulf %108, %109 : vector<32x1xf32>
    %cst_48 = arith.constant 9.99999974E-6 : f32
    %111 = vector.broadcast %cst_48 : f32 to vector<32x1xf32>
    %112 = arith.addf %110, %111 : vector<32x1xf32>
    %113 = math.rsqrt %112 : vector<32x1xf32>
    %114 = vector.broadcast %113 : vector<32x1xf32> to vector<32x128xf32>
    %115 = arith.mulf %101, %114 : vector<32x128xf32>
    %116 = vector.broadcast %93 : vector<1x128xf32> to vector<32x128xf32>
    %117 = arith.mulf %115, %116 : vector<32x128xf32>
    %118 = vector.broadcast %94 : vector<1x128xf32> to vector<32x128xf32>
    %119 = arith.addf %117, %118 : vector<32x128xf32>
    %120 = vector.shape_cast %119 : vector<32x128xf32> to vector<2x16x128xf32>
    %c0_49 = arith.constant 0 : index
    %c0_50 = arith.constant 0 : index
    %c0_51 = arith.constant 0 : index
    %121 = vector.load %arg10[%c0_49, %c0_50, %c0_51] : memref<2x16x128xf32, #tpu.memory_space<vmem>>, vector<2x16x128xf32>
    tpu.vector_store %arg10[%c0_49, %c0_50, %c0_51], %120 {strides = array<i32>} : memref<2x16x128xf32, #tpu.memory_space<vmem>>, vector<2x16x128xf32>,
    return
  }
  func.func @transform_0(%arg0: i32) -> (i32, i32, i32) {
    %c0_i32 = arith.constant 0 : i32
    %c0_i32_0 = arith.constant 0 : i32
    %c0_i32_1 = arith.constant 0 : i32
    return %arg0, %c0_i32, %c0_i32_0 : i32, i32, i32
  }
  func.func @transform_1(%arg0: i32) -> (i32, i32) {
    %c0_i32 = arith.constant 0 : i32
    %c0_i32_0 = arith.constant 0 : i32
    %c0_i32_1 = arith.constant 0 : i32
    return %c0_i32, %c0_i32_0 : i32, i32
  }
  func.func @transform_2(%arg0: i32) -> (i32, i32) {
    %c0_i32 = arith.constant 0 : i32
    %c0_i32_0 = arith.constant 0 : i32
    %c0_i32_1 = arith.constant 0 : i32
    return %c0_i32, %c0_i32_0 : i32, i32
  }
  func.func @transform_3(%arg0: i32) -> (i32, i32) {
    %c0_i32 = arith.constant 0 : i32
    %c0_i32_0 = arith.constant 0 : i32
    %c0_i32_1 = arith.constant 0 : i32
    return %c0_i32, %c0_i32_0 : i32, i32
  }
  func.func @transform_4(%arg0: i32) -> (i32, i32) {
    %c0_i32 = arith.constant 0 : i32
    %c0_i32_0 = arith.constant 0 : i32
    %c0_i32_1 = arith.constant 0 : i32
    return %c0_i32, %c0_i32_0 : i32, i32
  }
  func.func @transform_5(%arg0: i32) -> (i32, i32) {
    %c0_i32 = arith.constant 0 : i32
    %c0_i32_0 = arith.constant 0 : i32
    %c0_i32_1 = arith.constant 0 : i32
    return %c0_i32, %c0_i32_0 : i32, i32
  }
  func.func @transform_6(%arg0: i32) -> (i32, i32) {
    %c0_i32 = arith.constant 0 : i32
    %c0_i32_0 = arith.constant 0 : i32
    %c0_i32_1 = arith.constant 0 : i32
    return %c0_i32, %c0_i32_0 : i32, i32
  }
  func.func @transform_7(%arg0: i32) -> (i32, i32) {
    %c0_i32 = arith.constant 0 : i32
    %c0_i32_0 = arith.constant 0 : i32
    %c0_i32_1 = arith.constant 0 : i32
    return %c0_i32, %c0_i32_0 : i32, i32
  }
  func.func @transform_8(%arg0: i32) -> (i32, i32) {
    %c0_i32 = arith.constant 0 : i32
    %c0_i32_0 = arith.constant 0 : i32
    %c0_i32_1 = arith.constant 0 : i32
    return %c0_i32, %c0_i32_0 : i32, i32
  }
  func.func @transform_9(%arg0: i32) -> (i32, i32, i32) {
    %c0_i32 = arith.constant 0 : i32
    %c0_i32_0 = arith.constant 0 : i32
    %c0_i32_1 = arith.constant 0 : i32
    return %arg0, %c0_i32, %c0_i32_0 : i32, i32, i32
  }
}

</mosaic_0001>

<bundles_post_ra>
// kernel: tpu_custom_call.1
= control target key start
LH: loop header
LB: loop body
LE: loop exit
PB: predicated region body
PF: predicated region fallthrough
CT: control target
= control target key end

     0   :  { %14 = vsyncpa [#allocation3], 0  ;;  %s1529_s0 = inlined_call_operand.hbm [shape: f32[2,16,128], index: 0, kind: input, shape index: {}]   ;;  %s1530_s1 = inlined_call_operand.hbm [shape: f32[384,128], index: 1, kind: input, shape index: {}]   ;;  %s1531_s2 = inlined_call_operand.vmem [shape: f32[1,128], index: 2, kind: input, shape index: {}]   ;;  %s1532_s3 = inlined_call_operand.vmem [shape: f32[1,128], index: 3, kind: input, shape index: {}]   ;;  %s1533_s4 = inlined_call_operand.vmem [shape: f32[1,128], index: 4, kind: input, shape index: {}]   ;;  %s1534_s5 = inlined_call_operand.hbm [shape: f32[384,128], index: 5, kind: input, shape index: {}]   ;;  %s1535_s6 = inlined_call_operand.vmem [shape: f32[1,128], index: 6, kind: input, shape index: {}]   ;;  %s1536_s7 = inlined_call_operand.vmem [shape: f32[1,128], index: 7, kind: input, shape index: {}]   ;;  %s1537_s8 = inlined_call_operand.vmem [shape: f32[1,128], index: 8, kind: input, shape index: {}]   ;;  %s1538_s9 = inlined_call_operand.hbm [shape: f32[2,16,128], index: 9, kind: output, shape index: {}]  }
   0x1   :  { %15 = vsyncpa [#allocation6], 0 }
   0x2   :  { %16 = vsyncpa [#allocation4], 0  ;;  %s1276_s30 = smov [#allocation5]   ;;  %s1277_s11 = smov [#allocation2]  }
   0x3   :  { %s34_s10 = sshll.u32 %s1276_s30, 4  ;;  %s22_s12 = sshll.u32 %s1277_s11, 4  ;;  %s35_s10 = int_to_ptr.vmem [resolvable:$true] %s34_s10  ;;  %s1332_s12 = int_to_ptr.vmem [resolvable:$true] %s22_s12 }
   0x4   :  { %s1182_s15 = scalar_lea.hbm %s1530_s1, 6144 }
   0x5   :  { %p1183_p0 = scmp.ne.s32.totalorder %s1530_s1, %s1182_s15  ;;  %p1186_p1 = scmp.lt.u32.totalorder %s1182_s15, %s1530_s1 }
   0x7   :  { %p1188_p2 = pnand %p1186_p1, %p1183_p0 }
   0x9   :  { %1191 = shalt.err (!%p1188_p2)
}
   0xa   :  { %s1192_s20 = scalar_lea.vmem %s35_s10, 6144  ;;  %p1197_p4 = scmp.lt.s32.totalorder %s35_s10, %s35_s10 }
   0xb   :  { %p1193_p3 = scmp.ne.s32.totalorder %s35_s10, %s1192_s20  ;;  %p1198_p5 = scmp.lt.s32.totalorder %s1192_s20, %s1192_s20 }
   0xd   :  { %p1199_p6 = por %p1198_p5, %p1197_p4 }
   0xf   :  { %p1200_p7 = pnand %p1199_p6, %p1193_p3 }
  0x11   :  { %1203 = shalt.err (!%p1200_p7)
}
  0x12   :  { %s1278_s21 = smov 128   ;;  %s1279_s22 = smov 8  }
  0x13   :  { %40 = dma.hbm_to_vmem [thread:$0]  %s1530_s1, 6144, %s35_s10, [#allocation6], %s1278_s21, %s1278_s21, %s1279_s22  }
  0x14   :  { %s1204_s27 = scalar_lea.hbm %s1529_s0, 512 }
  0x15   :  { %p1205_p8 = scmp.ne.s32.totalorder %s1529_s0, %s1204_s27  ;;  %p1208_p9 = scmp.lt.u32.totalorder %s1204_s27, %s1529_s0 }
  0x17   :  { %p1210_p10 = pnand %p1208_p9, %p1205_p8 }
  0x19   :  { %1213 = shalt.err (!%p1210_p10)
}
  0x1a   :  { %s1214_s13 = scalar_lea.vmem %s1332_s12, 512  ;;  %p1219_p12 = scmp.lt.s32.totalorder %s1332_s12, %s1332_s12 }
  0x1b   :  { %p1215_p11 = scmp.ne.s32.totalorder %s1332_s12, %s1214_s13  ;;  %p1220_p13 = scmp.lt.s32.totalorder %s1214_s13, %s1214_s13 }
  0x1d   :  { %p1221_p0 = por %p1220_p13, %p1219_p12 }
  0x1f   :  { %p1222_p1 = pnand %p1221_p0, %p1215_p11 }
  0x21   :  { %1225 = shalt.err (!%p1222_p1)
}
  0x22   :  { %28 = dma.hbm_to_vmem [thread:$0]  %s1529_s0, 512, %s1332_s12, [#allocation3], %s1278_s21, %s1278_s21, %s1279_s22  }
  0x23   :  { %s1280_s14 = smov [#allocation7]   ;;  %s1226_s18 = scalar_lea.hbm %s1534_s5, 6144 }
  0x24   :  { %s52_s15 = sshll.u32 %s1280_s14, 4  ;;  %p1227_p2 = scmp.ne.s32.totalorder %s1534_s5, %s1226_s18  ;;  %s53_s15 = int_to_ptr.vmem [resolvable:$true] %s52_s15 }
  0x25   :  { %p1230_p3 = scmp.lt.u32.totalorder %s1226_s18, %s1534_s5 }
  0x27   :  { %p1232_p4 = pnand %p1230_p3, %p1227_p2 }
  0x29   :  { %1235 = shalt.err (!%p1232_p4)
}
  0x2a   :  { %s1236_s25 = scalar_lea.vmem %s53_s15, 6144  ;;  %p1241_p6 = scmp.lt.s32.totalorder %s53_s15, %s53_s15 }
  0x2b   :  { %p1237_p5 = scmp.ne.s32.totalorder %s53_s15, %s1236_s25  ;;  %p1242_p7 = scmp.lt.s32.totalorder %s1236_s25, %s1236_s25 }
  0x2d   :  { %p1243_p8 = por %p1242_p7, %p1241_p6 }
  0x2f   :  { %p1244_p9 = pnand %p1243_p8, %p1237_p5 }
  0x31   :  { %1247 = shalt.err (!%p1244_p9)
}
  0x32   :  { %58 = dma.hbm_to_vmem [thread:$0]  %s1534_s5, 6144, %s53_s15, [#allocation6], %s1278_s21, %s1278_s21, %s1279_s22  }
  0x33   :  { %1270 = dma.done.wait [#allocation3], 512  }
  0x34   :  { %1271 = vsyncadd [#allocation3], 4294966784 }
  0x35   :  { %1272 = dma.done.wait [#allocation6], 12288  }
  0x36   :  { %1273 = vsyncadd [#allocation6], 4294955008  ;;  %v135_v0 = vld [vmem:[#allocation5 + $0x80] sm:$0xff]  ;;  %v136_v1 = vld [vmem:[#allocation5 + $0x88] sm:$0xff]  ;;  %v78_v36 = vlaneseq }
  0x37   :  { %v119_v2 = vld [vmem:[#allocation5] sm:$0xff]  ;;  %v1016_v3 = vpack.c.bf16 %v136_v1, %v135_v0  ;;  %v120_v4 = vld [vmem:[#allocation5 + $0x8] sm:$0xff]  ;;  %v137_v5 = vld [vmem:[#allocation5 + $0x90] sm:$0xff] }
  0x38   :  { %v138_v6 = vld [vmem:[#allocation5 + $0x98] sm:$0xff]  ;;  %v1018_v7 = vpack.c.bf16 %v120_v4, %v119_v2  ;;  %v151_v9 = vld [vmem:[#allocation5 + $0x100] sm:$0xff]  ;;  %v152_v10 = vld [vmem:[#allocation5 + $0x108] sm:$0xff]  ;;  %v1385_v46 = vshrl.u32 %v78_v36, 7 }
  0x39   :  { %v1020_v8 = vpack.c.bf16 %v138_v6, %v137_v5  ;;  %v121_v11 = vld [vmem:[#allocation5 + $0x10] sm:$0xff]  ;;  %1017 = vmatprep.subr.bf16.mxu0 %v1016_v3  ;;  %v1048_v12 = vpack.c.bf16 %v152_v10, %v151_v9  ;;  %v122_v13 = vld [vmem:[#allocation5 + $0x18] sm:$0xff]  ;;  %v139_v14 = vld [vmem:[#allocation5 + $0xa0] sm:$0xff] }
  0x3a   :  { %v140_v15 = vld [vmem:[#allocation5 + $0xa8] sm:$0xff]  ;;  %1019 = vmatpush3.bf16.msra.mxu0 %v1018_v7  ;;  %v1022_v16 = vpack.c.bf16 %v122_v13, %v121_v11  ;;  %v153_v17 = vld [vmem:[#allocation5 + $0x110] sm:$0xff]  ;;  %v154_v18 = vld [vmem:[#allocation5 + $0x118] sm:$0xff]  ;;  %vm104_vm0 = vcmp.lt.s32.totalorder %v1385_v46, 7  ;;  %vm85_vm1 = vcmp.lt.s32.totalorder %v1385_v46, 1  ;;  %vm90_vm2 = vcmp.ge.s32.totalorder %v1385_v46, 1 }
  0x3b   :  { %1021 = vmatprep.subr.bf16.mxu0 %v1020_v8  ;;  %1049 = vmatprep.subr.bf16.mxu1 %v1048_v12  ;;  %v1024_v19 = vpack.c.bf16 %v140_v15, %v139_v14  ;;  %v1052_v20 = vpack.c.bf16 %v154_v18, %v153_v17  ;;  %v123_v21 = vld [vmem:[#allocation5 + $0x20] sm:$0xff]  ;;  %v124_v22 = vld [vmem:[#allocation5 + $0x28] sm:$0xff]  ;;  %v141_v23 = vld [vmem:[#allocation5 + $0xb0] sm:$0xff] }
  0x3c   :  { %1051 = vmatpush3.bf16.msra.mxu1 %v1048_v12  ;;  %v142_v24 = vld [vmem:[#allocation5 + $0xb8] sm:$0xff]  ;;  %v155_v25 = vld [vmem:[#allocation5 + $0x120] sm:$0xff]  ;;  %v156_v26 = vld [vmem:[#allocation5 + $0x128] sm:$0xff]  ;;  %v1026_v28 = vpack.c.bf16 %v124_v22, %v123_v21 }
  0x3d   :  { %1053 = vmatprep.subr.bf16.mxu1 %v1052_v20  ;;  %v1056_v27 = vpack.c.bf16 %v156_v26, %v155_v25  ;;  %v157_v29 = vld [vmem:[#allocation5 + $0x130] sm:$0xff]  ;;  %v158_v30 = vld [vmem:[#allocation5 + $0x138] sm:$0xff]  ;;  %v1028_v31 = vpack.c.bf16 %v142_v24, %v141_v23  ;;  %v143_v34 = vld [vmem:[#allocation5 + $0xc0] sm:$0xff] }
  0x3e   :  { %1023 = vmatpush3.bf16.msra.mxu0 %v1022_v16  ;;  %v125_v32 = vld [vmem:[#allocation5 + $0x30] sm:$0xff]  ;;  %v126_v33 = vld [vmem:[#allocation5 + $0x38] sm:$0xff]  ;;  %v144_v35 = vld [vmem:[#allocation5 + $0xc8] sm:$0xff]  ;;  %v1060_v37 = vpack.c.bf16 %v158_v30, %v157_v29 }
  0x3f   :  { %1025 = vmatprep.subr.bf16.mxu0 %v1024_v19  ;;  %v1030_v38 = vpack.c.bf16 %v126_v33, %v125_v32  ;;  %v159_v39 = vld [vmem:[#allocation5 + $0x140] sm:$0xff]  ;;  %v160_v40 = vld [vmem:[#allocation5 + $0x148] sm:$0xff]  ;;  %v1032_v41 = vpack.c.bf16 %v144_v35, %v143_v34  ;;  %v145_v44 = vld [vmem:[#allocation5 + $0xd0] sm:$0xff]  ;;  %v1402_v19 = vadd.s32 8, %v1385_v46 }
  0x40   :  { %1055 = vmatpush3.bf16.msra.mxu1 %v1052_v20  ;;  %v127_v42 = vld [vmem:[#allocation5 + $0x40] sm:$0xff]  ;;  %v128_v43 = vld [vmem:[#allocation5 + $0x48] sm:$0xff]  ;;  %v146_v45 = vld [vmem:[#allocation5 + $0xd8] sm:$0xff]  ;;  %v1064_v47 = vpack.c.bf16 %v160_v40, %v159_v39 }
  0x41   :  { %1057 = vmatprep.subr.bf16.mxu1 %v1056_v27  ;;  %v1387_v48 = vld [vmem:[#allocation2] sm:$0xff]  ;;  %v1034_v49 = vpack.c.bf16 %v128_v43, %v127_v42  ;;  %v161_v50 = vld [vmem:[#allocation5 + $0x150] sm:$0xff]  ;;  %v162_v51 = vld [vmem:[#allocation5 + $0x158] sm:$0xff]  ;;  %v1036_v54 = vpack.c.bf16 %v146_v45, %v145_v44  ;;  %vm112_vm3 = vcmp.lt.s32.totalorder %v1402_v19, 15 }
  0x42   :  { %1027 = vmatpush3.bf16.msra.mxu0 %v1026_v28  ;;  %v100_v52 = vrot.slane %v1387_v48, 1  ;;  %238 = vmatprep.mubr.f32.mxu0 %v1387_v48  ;;  %v1391_v53 = vld [vmem:[#allocation2 + $0x8] sm:$0xff]  ;;  %v129_v55 = vld [vmem:[#allocation5 + $0x50] sm:$0xff]  ;;  %v130_v56 = vld [vmem:[#allocation5 + $0x58] sm:$0xff]  ;;  %v1068_v60 = vpack.c.bf16 %v162_v51, %v161_v50  ;;  %v81_v17 = vrot.slane %v1387_v48, 7 }
  0x43   :  { %1029 = vmatprep.subr.bf16.mxu0 %v1028_v31  ;;  %v101_v57 = vrot.slane %v1391_v53, 1  ;;  %v147_v58 = vld [vmem:[#allocation5 + $0xe0] sm:$0xff]  ;;  %v148_v59 = vld [vmem:[#allocation5 + $0xe8] sm:$0xff]  ;;  %v1038_v62 = vpack.c.bf16 %v130_v56, %v129_v55  ;;  %v149_v4 = vld [vmem:[#allocation5 + $0xf0] sm:$0xff]  ;;  %v82_v23 = vrot.slane %v1391_v53, 7 }
  0x44   :  { %1059 = vmatpush3.bf16.msra.mxu1 %v1056_v27  ;;  %v163_v63 = vld [vmem:[#allocation5 + $0x160] sm:$0xff]  ;;  %v164_v0 = vld [vmem:[#allocation5 + $0x168] sm:$0xff]  ;;  %v1040_v1 = vpack.c.bf16 %v148_v59, %v147_v58  ;;  %v150_v5 = vld [vmem:[#allocation5 + $0xf8] sm:$0xff] }
  0x45   :  { %1061 = vmatprep.subr.bf16.mxu1 %v1060_v37  ;;  %v107_v61 = vsel %vm104_vm0, %v100_v52, %v101_v57  ;;  %v131_v2 = vld [vmem:[#allocation5 + $0x60] sm:$0xff]  ;;  %v132_v3 = vld [vmem:[#allocation5 + $0x68] sm:$0xff]  ;;  %v1072_v6 = vpack.c.bf16 %v164_v0, %v163_v63  ;;  %v165_v8 = vld [vmem:[#allocation5 + $0x170] sm:$0xff]  ;;  %v1044_v10 = vpack.c.bf16 %v150_v5, %v149_v4  ;;  %v88_v26 = vsel %vm85_vm1, %v81_v17, %v82_v23 }
  0x46   :  { %1031 = vmatpush3.bf16.msra.mxu0 %v1030_v38  ;;  %972 = vmatprep.mubr.f32.mxu1 %v107_v61  ;;  %v1042_v7 = vpack.c.bf16 %v132_v3, %v131_v2  ;;  %v166_v9 = vld [vmem:[#allocation5 + $0x178] sm:$0xff]  ;;  %v133_v11 = vld [vmem:[#allocation5 + $0x70] sm:$0xff]  ;;  %v798_v33 = vld [vmem:[%s1531_s2] ss:$0 sm:$0xff] }
  0x47   :  { %1033 = vmatprep.subr.bf16.mxu0 %v1032_v41  ;;  %v134_v12 = vld [vmem:[#allocation5 + $0x78] sm:$0xff]  ;;  %v1076_v14 = vpack.c.bf16 %v166_v9, %v165_v8  ;;  %v76_v15 = vld [vmem:[#allocation2 + $0x10] sm:$0xff] }
  0x48   :  { %1063 = vmatpush3.bf16.msra.mxu1 %v1060_v37  ;;  %v77_v13 = vld [vmem:[#allocation2 + $0x18] sm:$0xff]  ;;  %v1046_v16 = vpack.c.bf16 %v134_v12, %v133_v11  ;;  %v102_v20 = vrot.slane %v76_v15, 1  ;;  %v83_v27 = vrot.slane %v76_v15, 7 }
  0x49   :  { %1065 = vmatprep.subr.bf16.mxu1 %v1064_v47  ;;  %v84_v18 = vrot.slane %v77_v13, 7  ;;  %v103_v21 = vrot.slane %v77_v13, 1 }
  0x4a   :  { %1035 = vmatpush3.bf16.msra.mxu0 %v1034_v49  ;;  %v106_v24 = vsel %vm104_vm0, %v101_v57, %v102_v20  ;;  %v87_v29 = vsel %vm85_vm1, %v82_v23, %v83_v27 }
  0x4b   :  { %1037 = vmatprep.subr.bf16.mxu0 %v1036_v54  ;;  %v89_v22 = vsel %vm85_vm1, %v84_v18, %v81_v17  ;;  %v105_v25 = vsel %vm104_vm0, %v102_v20, %v103_v21  ;;  %v108_v28 = vsel %vm104_vm0, %v103_v21, %v100_v52  ;;  %v86_v30 = vsel %vm85_vm1, %v83_v27, %v84_v18 }
  0x4c   :  { %1067 = vmatpush3.bf16.msra.mxu1 %v1064_v47 }
  0x4d   :  { %1069 = vmatprep.subr.bf16.mxu1 %v1068_v60 }
  0x4e   :  { %1039 = vmatpush3.bf16.msra.mxu0 %v1038_v62 }
  0x4f   :  { %1041 = vmatprep.subr.bf16.mxu0 %v1040_v1 }
  0x50   :  { %1071 = vmatpush3.bf16.msra.mxu1 %v1068_v60 }
  0x51   :  { %1073 = vmatprep.subr.bf16.mxu1 %v1072_v6 }
  0x52   :  { %1043 = vmatpush3.bf16.msra.mxu0 %v1042_v7 }
  0x53   :  { %1045 = vmatprep.subr.bf16.mxu0 %v1044_v10 }
  0x54   :  { %1075 = vmatpush3.bf16.msra.mxu1 %v1072_v6 }
  0x55   :  { %1077 = vmatprep.subr.bf16.mxu1 %v1076_v14 }
  0x56   :  { %1047 = vmatpush3.bf16.msra.mxu0 %v1046_v16 }
  0x58   :  { %1079 = vmatpush3.bf16.msra.mxu1 %v1076_v14  ;;  %v1436_v14 = vand.u32 127, %v78_v36 }
  0x59   :  { %799 = vmatmul.mubr.msk.f32.vlgmr.msra.gmra.mrb[0].mxu0 %vm90_vm2, %v89_v22 }
  0x5a   :  { %243 = vmatprep.mubr.f32.mxu0 %v1391_v53  ;;  %vm384_vm4 = vcmp.lt.s32.totalorder %v1436_v14, 32  ;;  %v810_v14 = vld [vmem:[%s1536_s7] ss:$0 sm:$0xff]  ;;  %s1281_s7 = smov [#allocation8]  }
  0x5b   :  { %973 = vmatmul.mubr.msk.f32.vlgmr.msra.gmra.mrb[0].mxu1 %vm112_vm3, %v106_v24  ;;  %s785_s1 = sshll.u32 %s1281_s7, 4  ;;  %s786_s1 = int_to_ptr.vmem [resolvable:$true] %s785_s1 }
  0x5c   :  { %975 = vmatprep.mubr.f32.mxu1 %v105_v25  ;;  %p1253_p11 = scmp.lt.s32.totalorder %s786_s1, %s786_s1 }
  0x5d   :  { %244 = vmatmul.mubr.f32.gmra.mrb[2].mxu0 %v88_v26 }
  0x5e   :  { %248 = vmatprep.mubr.f32.mxu0 %v76_v15 }
  0x5f   :  { %976 = vmatmul.mubr.msk.f32.gmra.mrb[2].mxu1 %vm112_vm3, %v108_v28 }
  0x61   :  { %800 = vmatmul.mubr.msk.f32.gmra.mrb[4].mxu0 %vm90_vm2, %v87_v29 }
  0x62   :  { %253 = vmatprep.mubr.f32.mxu0 %v77_v13 }
  0x65   :  { %254 = vmatmul.mubr.f32.gmra.mrb[6].mxu0 %v86_v30 }
 0x12c   :  { %v844_v31 = vpop.f32.mrb[0].mxu0 }
 0x12d   :  { %v845_v32 = vpop.f32.mrb[1].mxu0 }
 0x12e   :  { %v846_v34 = vadd.f32 %v845_v32, %v844_v31  ;;  %v974_v35 = vpop.f32.mrb[0].mxu1 }
 0x12f   :  { %v325_v37 = vpop.f32.mrb[1].mxu1 }
 0x130   :  { %v847_v38 = vpop.f32.mrb[2].mxu0  ;;  %v241_v39 = vadd.f32 %v846_v34, %v798_v33 }
 0x131   :  { %v848_v40 = vpop.f32.mrb[3].mxu0 }
 0x132   :  { %v849_v41 = vadd.f32 %v848_v40, %v847_v38  ;;  %v326_v42 = vadd.f32 %v325_v37, %v241_v39  ;;  %v977_v43 = vpop.f32.mrb[2].mxu1  ;;  %v478_v37 = vld [vmem:[#allocation7 + $0x88] sm:$0xff]  ;;  %v461_v39 = vld [vmem:[#allocation7] sm:$0xff] }
 0x133   :  { %v335_v44 = vpop.f32.mrb[3].mxu1  ;;  %v462_v40 = vld [vmem:[#allocation7 + $0x8] sm:$0xff] }
 0x134   :  { %v246_v45 = vadd.f32 %v849_v41, %v798_v33  ;;  %v348_v47 = vmul.f32 0.70710677, %v326_v42  ;;  %v850_v48 = vpop.f32.mrb[4].mxu0  ;;  %v344_v63 = vmul.f32 0.5, %v326_v42  ;;  %v1082_v41 = vpack.c.bf16 %v462_v40, %v461_v39  ;;  %v479_v42 = vld [vmem:[#allocation7 + $0x90] sm:$0xff]  ;;  %v492_v40 = vld [vmem:[#allocation7 + $0xf8] sm:$0xff] }
 0x135   :  { %v851_v49 = vpop.f32.mrb[5].mxu0  ;;  %v491_v39 = vld [vmem:[#allocation7 + $0xf0] sm:$0xff] }
 0x136   :  { %v331_v50 = vadd.f32 %v974_v35, %v246_v45  ;;  %1150 = verf.f32 %v348_v47  ;;  %v852_v51 = vadd.f32 %v851_v49, %v850_v48  ;;  %v477_v35 = vld [vmem:[#allocation7 + $0x80] sm:$0xff]  ;;  %v494_v47 = vld [vmem:[#allocation7 + $0x108] sm:$0xff]  ;;  %v463_v48 = vld [vmem:[#allocation7 + $0x10] sm:$0xff] }
 0x137   :  { %v1080_v38 = vpack.c.bf16 %v478_v37, %v477_v35  ;;  %v464_v49 = vld [vmem:[#allocation7 + $0x18] sm:$0xff]  ;;  %v474_v35 = vld [vmem:[#allocation7 + $0x68] sm:$0xff] }
 0x138   :  { %v349_v52 = vmul.f32 0.70710677, %v331_v50  ;;  %v853_v53 = vpop.f32.mrb[6].mxu0  ;;  %v251_v54 = vadd.f32 %v852_v51, %v798_v33  ;;  %v345_v3 = vmul.f32 0.5, %v331_v50  ;;  %v1086_v51 = vpack.c.bf16 %v464_v49, %v463_v48  ;;  %v507_v49 = vld [vmem:[#allocation7 + $0x170] sm:$0xff] }
 0x139   :  { %v854_v55 = vpop.f32.mrb[7].mxu0  ;;  %1081 = vmatprep.subr.bf16.mxu0 %v1080_v38 }
 0x13a   :  { %v855_v56 = vadd.f32 %v854_v55, %v853_v53  ;;  %v336_v57 = vadd.f32 %v335_v44, %v251_v54  ;;  %1152 = verf.f32 %v349_v52  ;;  %1083 = vmatpush3.bf16.msra.mxu0 %v1082_v41  ;;  %v493_v44 = vld [vmem:[#allocation7 + $0x100] sm:$0xff]  ;;  %v482_v53 = vld [vmem:[#allocation7 + $0xa8] sm:$0xff]  ;;  %v495_v54 = vld [vmem:[#allocation7 + $0x110] sm:$0xff] }
 0x13b   :  { %v1112_v50 = vpack.c.bf16 %v494_v47, %v493_v44  ;;  %v481_v52 = vld [vmem:[#allocation7 + $0xa0] sm:$0xff]  ;;  %v475_v44 = vld [vmem:[#allocation7 + $0x70] sm:$0xff] }
 0x13c   :  { %v256_v58 = vadd.f32 %v855_v56, %v798_v33  ;;  %v350_v59 = vmul.f32 0.70710677, %v336_v57  ;;  %v346_v7 = vmul.f32 0.5, %v336_v57  ;;  %v1088_v55 = vpack.c.bf16 %v482_v53, %v481_v52  ;;  %v496_v56 = vld [vmem:[#allocation7 + $0x118] sm:$0xff]  ;;  %v465_v57 = vld [vmem:[#allocation7 + $0x20] sm:$0xff] }
 0x13d   :  { %1113 = vmatprep.subr.bf16.mxu1 %v1112_v50  ;;  %v505_v41 = vld [vmem:[#allocation7 + $0x160] sm:$0xff] }
 0x13e   :  { %v341_v60 = vadd.f32 %v977_v43, %v256_v58  ;;  %1154 = verf.f32 %v350_v59  ;;  %v480_v43 = vld [vmem:[#allocation7 + $0x98] sm:$0xff]  ;;  %1115 = vmatpush3.bf16.msra.mxu1 %v1112_v50  ;;  %v466_v58 = vld [vmem:[#allocation7 + $0x28] sm:$0xff]  ;;  %v1116_v59 = vpack.c.bf16 %v496_v56, %v495_v54 }
 0x13f   :  { %v1084_v45 = vpack.c.bf16 %v480_v43, %v479_v42  ;;  %v1108_v42 = vpack.c.bf16 %v492_v40, %v491_v39  ;;  %v506_v43 = vld [vmem:[#allocation7 + $0x168] sm:$0xff]  ;;  %v508_v50 = vld [vmem:[#allocation7 + $0x178] sm:$0xff] }
 0x140   :  { %v1151_v61 = vpop.eup %1150  ;;  %v351_v62 = vmul.f32 0.70710677, %v341_v60  ;;  %v347_v11 = vmul.f32 0.5, %v341_v60  ;;  %v1090_v60 = vpack.c.bf16 %v466_v58, %v465_v57  ;;  %1117 = vmatprep.subr.bf16.mxu1 %v1116_v59  ;;  %v1136_v47 = vpack.c.bf16 %v506_v43, %v505_v41 }
 0x141   :  { %v356_v0 = vadd.f32 1.0, %v1151_v61  ;;  %1085 = vmatprep.subr.bf16.mxu0 %v1084_v45  ;;  %v483_v61 = vld [vmem:[#allocation7 + $0xb0] sm:$0xff]  ;;  %v476_v45 = vld [vmem:[#allocation7 + $0x78] sm:$0xff] }
 0x142   :  { %1156 = verf.f32 %v351_v62  ;;  %1087 = vmatpush3.bf16.msra.mxu0 %v1086_v51  ;;  %v484_v62 = vld [vmem:[#allocation7 + $0xb8] sm:$0xff]  ;;  %1119 = vmatpush3.bf16.msra.mxu1 %v1116_v59  ;;  %v1110_v48 = vpack.c.bf16 %v476_v45, %v475_v44  ;;  %v1140_v51 = vpack.c.bf16 %v508_v50, %v507_v49 }
 0x143   :  { %v360_v1 = vmul.f32 %v356_v0, %v344_v63  ;;  %1089 = vmatprep.subr.bf16.mxu0 %v1088_v55  ;;  %v497_v63 = vld [vmem:[#allocation7 + $0x120] sm:$0xff]  ;;  %v1092_v0 = vpack.c.bf16 %v484_v62, %v483_v61 }
 0x144   :  { %v1153_v2 = vpop.eup %1152  ;;  %v803_v62 = vld [vmem:[%s1532_s3] ss:$0 sm:$0xff] }
 0x145   :  { %368 = vadd.xlane.f32.xlu0 %v360_v1  ;;  %v357_v4 = vadd.f32 1.0, %v1153_v2  ;;  %v467_v2 = vld [vmem:[#allocation7 + $0x30] sm:$0xff] }
 0x146   :  { %1091 = vmatpush3.bf16.msra.mxu0 %v1090_v60 }
 0x147   :  { %v361_v5 = vmul.f32 %v357_v4, %v345_v3  ;;  %v468_v3 = vld [vmem:[#allocation7 + $0x38] sm:$0xff]  ;;  %1093 = vmatprep.subr.bf16.mxu0 %v1092_v0 }
 0x148   :  { %v1155_v6 = vpop.eup %1154 }
 0x149   :  { %370 = vadd.xlane.f32.xlu1 %v361_v5  ;;  %v358_v8 = vadd.f32 1.0, %v1155_v6  ;;  %v485_v6 = vld [vmem:[#allocation7 + $0xc0] sm:$0xff] }
 0x14b   :  { %v362_v9 = vmul.f32 %v358_v8, %v346_v7  ;;  %v486_v7 = vld [vmem:[#allocation7 + $0xc8] sm:$0xff]  ;;  %v499_v8 = vld [vmem:[#allocation7 + $0x130] sm:$0xff] }
 0x14c   :  { %v1157_v10 = vpop.eup %1156 }
 0x14d   :  { %372 = vadd.xlane.f32.xlu1 %v362_v9  ;;  %v359_v12 = vadd.f32 1.0, %v1157_v10  ;;  %v500_v10 = vld [vmem:[#allocation7 + $0x138] sm:$0xff] }
 0x14f   :  { %v363_v13 = vmul.f32 %v359_v12, %v347_v11  ;;  %v469_v11 = vld [vmem:[#allocation7 + $0x40] sm:$0xff]  ;;  %v470_v12 = vld [vmem:[#allocation7 + $0x48] sm:$0xff] }
 0x151   :  { %374 = vadd.xlane.f32.xlu0 %v363_v13 }
 0x1d2   :  { %v369_v15 = vpop.xlane.xlu0 %368 }
 0x1d3   :  { %v376_v16 = vmul.f32 0.03125, %v369_v15  ;;  %v1098_v15 = vpack.c.bf16 %v470_v12, %v469_v11 }
 0x1d5   :  { %v1438_v17 = vsub.f32 %v360_v1, %v376_v16  ;;  %v498_v1 = vld [vmem:[#allocation7 + $0x128] sm:$0xff]  ;;  %v487_v16 = vld [vmem:[#allocation7 + $0xd0] sm:$0xff] }
 0x1d6   :  { %v371_v18 = vpop.xlane.xlu1 %370  ;;  %v1120_v4 = vpack.c.bf16 %v498_v1, %v497_v63 }
 0x1d7   :  { %v377_v20 = vmul.f32 0.03125, %v371_v18  ;;  %v385_v21 = vmul.f32 %v1438_v17, %v1438_v17  ;;  %v488_v18 = vld [vmem:[#allocation7 + $0xd8] sm:$0xff] }
 0x1d8   :  { %1121 = vmatprep.subr.bf16.mxu1 %v1120_v4 }
 0x1d9   :  { %v1443_v22 = vsub.f32 %v361_v5, %v377_v20  ;;  %v389_v23 = vsel %vm384_vm4, %v385_v21, 0.0  ;;  %v1094_v5 = vpack.c.bf16 %v468_v3, %v467_v2  ;;  %1123 = vmatpush3.bf16.msra.mxu1 %v1120_v4  ;;  %v501_v20 = vld [vmem:[#allocation7 + $0x140] sm:$0xff]  ;;  %v1100_v21 = vpack.c.bf16 %v488_v18, %v487_v16 }
 0x1da   :  { %393 = vadd.xlane.f32.xlu0 %v389_v23  ;;  %v373_v24 = vpop.xlane.xlu1 %372  ;;  %v502_v23 = vld [vmem:[#allocation7 + $0x148] sm:$0xff]  ;;  %v804_v2 = vld [vmem:[%s1533_s4] ss:$0 sm:$0xff] }
 0x1db   :  { %v386_v36 = vmul.f32 %v1443_v22, %v1443_v22  ;;  %v378_v25 = vmul.f32 0.03125, %v373_v24  ;;  %1095 = vmatpush3.bf16.msra.mxu0 %v1094_v5  ;;  %v471_v24 = vld [vmem:[#allocation7 + $0x50] sm:$0xff] }
 0x1dd   :  { %v390_v26 = vsel %vm384_vm4, %v386_v36, 0.0  ;;  %v1451_v29 = vsub.f32 %v362_v9, %v378_v25  ;;  %v1096_v9 = vpack.c.bf16 %v486_v7, %v485_v6  ;;  %v472_v36 = vld [vmem:[#allocation7 + $0x58] sm:$0xff]  ;;  %v1128_v25 = vpack.c.bf16 %v502_v23, %v501_v20 }
 0x1de   :  { %v375_v27 = vpop.xlane.xlu0 %374  ;;  %395 = vadd.xlane.f32.xlu0 %v390_v26  ;;  %v1102_v26 = vpack.c.bf16 %v472_v36, %v471_v24 }
 0x1df   :  { %v379_v28 = vmul.f32 0.03125, %v375_v27  ;;  %v387_v33 = vmul.f32 %v1451_v29, %v1451_v29  ;;  %1097 = vmatprep.subr.bf16.mxu0 %v1096_v9  ;;  %v489_v27 = vld [vmem:[#allocation7 + $0xe0] sm:$0xff] }
 0x1e0   :  { %1099 = vmatpush3.bf16.msra.mxu0 %v1098_v15 }
 0x1e1   :  { %v1453_v30 = vsub.f32 %v363_v13, %v379_v28  ;;  %v391_v34 = vsel %vm384_vm4, %v387_v33, 0.0  ;;  %v1124_v13 = vpack.c.bf16 %v500_v10, %v499_v8  ;;  %1101 = vmatprep.subr.bf16.mxu0 %v1100_v21  ;;  %v490_v28 = vld [vmem:[#allocation7 + $0xe8] sm:$0xff]  ;;  %v504_v33 = vld [vmem:[#allocation7 + $0x158] sm:$0xff] }
 0x1e3   :  { %v388_v31 = vmul.f32 %v1453_v30, %v1453_v30  ;;  %1125 = vmatprep.subr.bf16.mxu1 %v1124_v13 }
 0x1e4   :  { %1127 = vmatpush3.bf16.msra.mxu1 %v1124_v13  ;;  %1103 = vmatpush3.bf16.msra.mxu0 %v1102_v26 }
 0x1e5   :  { %v392_v32 = vsel %vm384_vm4, %v388_v31, 0.0  ;;  %1129 = vmatprep.subr.bf16.mxu1 %v1128_v25  ;;  %v503_v31 = vld [vmem:[#allocation7 + $0x150] sm:$0xff] }
 0x1e6   :  { %399 = vadd.xlane.f32.xlu1 %v392_v32  ;;  %v1104_v32 = vpack.c.bf16 %v490_v28, %v489_v27  ;;  %v1132_v37 = vpack.c.bf16 %v504_v33, %v503_v31 }
 0x1e8   :  { %1131 = vmatpush3.bf16.msra.mxu1 %v1128_v25  ;;  %1105 = vmatprep.subr.bf16.mxu0 %v1104_v32 }
 0x1e9   :  { %1133 = vmatprep.subr.bf16.mxu1 %v1132_v37 }
 0x1ea   :  { %397 = vadd.xlane.f32.xlu1 %v391_v34  ;;  %v473_v34 = vld [vmem:[#allocation7 + $0x60] sm:$0xff] }
 0x1eb   :  { %v1106_v38 = vpack.c.bf16 %v474_v35, %v473_v34 }
 0x1ec   :  { %1135 = vmatpush3.bf16.msra.mxu1 %v1132_v37 }
 0x1ed   :  { %1107 = vmatpush3.bf16.msra.mxu0 %v1106_v38  ;;  %1137 = vmatprep.subr.bf16.mxu1 %v1136_v47  ;;  %v805_v38 = vld [vmem:[%s1535_s6] ss:$0 sm:$0xff] }
 0x1ee   :  { %1109 = vmatprep.subr.bf16.mxu0 %v1108_v42 }
 0x1f0   :  { %1139 = vmatpush3.bf16.msra.mxu1 %v1136_v47 }
 0x1f1   :  { %1111 = vmatpush3.bf16.msra.mxu0 %v1110_v48  ;;  %1141 = vmatprep.subr.bf16.mxu1 %v1140_v51 }
 0x1f4   :  { %1143 = vmatpush3.bf16.msra.mxu1 %v1140_v51 }
 0x267   :  { %v394_v52 = vpop.xlane.xlu0 %393 }
 0x268   :  { %v401_v53 = vmul.f32 0.03125, %v394_v52 }
 0x26a   :  { %v405_v54 = vadd.f32 1e-05, %v401_v53 }
 0x26b   :  { %v396_v55 = vpop.xlane.xlu0 %395 }
 0x26c   :  { %1158 = vrsqrt.f32 %v405_v54  ;;  %v402_v56 = vmul.f32 0.03125, %v396_v55 }
 0x26e   :  { %v406_v57 = vadd.f32 1e-05, %v402_v56 }
 0x270   :  { %1160 = vrsqrt.f32 %v406_v57 }
 0x273   :  { %v400_v58 = vpop.xlane.xlu1 %399 }
 0x274   :  { %v404_v59 = vmul.f32 0.03125, %v400_v58 }
 0x276   :  { %v1159_v60 = vpop.eup %1158  ;;  %v408_v61 = vadd.f32 1e-05, %v404_v59 }
 0x277   :  { %v398_v63 = vpop.xlane.xlu1 %397  ;;  %v413_v0 = vmul.f32 %v1159_v60, %v1438_v17 }
 0x278   :  { %1162 = vrsqrt.f32 %v408_v61  ;;  %v403_v1 = vmul.f32 0.03125, %v398_v63 }
 0x279   :  { %v423_v3 = vmul.f32 %v803_v62, %v413_v0 }
 0x27a   :  { %v1161_v4 = vpop.eup %1160  ;;  %v407_v5 = vadd.f32 1e-05, %v403_v1 }
 0x27b   :  { %v414_v6 = vmul.f32 %v1161_v4, %v1443_v22  ;;  %v433_v7 = vadd.f32 %v804_v2, %v423_v3 }
 0x27c   :  { %1164 = vrsqrt.f32 %v407_v5 }
 0x27d   :  { %580 = vmatprep.mubr.f32.mxu0 %v433_v7  ;;  %v424_v8 = vmul.f32 %v803_v62, %v414_v6  ;;  %v449_v10 = vrot.slane %v433_v7, 1  ;;  %v437_v21 = vrot.slane %v433_v7, 7 }
 0x27f   :  { %v434_v9 = vadd.f32 %v804_v2, %v424_v8 }
 0x281   :  { %v450_v11 = vrot.slane %v434_v9, 1  ;;  %v438_v25 = vrot.slane %v434_v9, 7 }
 0x282   :  { %v1163_v12 = vpop.eup %1162 }
 0x283   :  { %v416_v17 = vmul.f32 %v1163_v12, %v1453_v30  ;;  %v455_v13 = vsel %vm104_vm0, %v449_v10, %v450_v11  ;;  %v443_v27 = vsel %vm85_vm1, %v437_v21, %v438_v25 }
 0x284   :  { %1010 = vmatprep.mubr.f32.mxu1 %v455_v13 }
 0x285   :  { %v426_v15 = vmul.f32 %v803_v62, %v416_v17 }
 0x286   :  { %v1165_v16 = vpop.eup %1164 }
 0x287   :  { %v415_v18 = vmul.f32 %v1165_v16, %v1451_v29  ;;  %v436_v20 = vadd.f32 %v804_v2, %v426_v15 }
 0x289   :  { %v425_v22 = vmul.f32 %v803_v62, %v415_v18  ;;  %v440_v23 = vrot.slane %v436_v20, 7  ;;  %v452_v26 = vrot.slane %v436_v20, 1 }
 0x28b   :  { %v435_v24 = vadd.f32 %v804_v2, %v425_v22  ;;  %v444_v36 = vsel %vm85_vm1, %v440_v23, %v437_v21  ;;  %v456_v33 = vsel %vm104_vm0, %v452_v26, %v449_v10 }
 0x28c   :  { %806 = vmatmul.mubr.msk.f32.vlgmr.msra.gmra.mrb[8].mxu0 %vm90_vm2, %v444_v36 }
 0x28d   :  { %585 = vmatprep.mubr.f32.mxu0 %v434_v9  ;;  %v451_v30 = vrot.slane %v435_v24, 1  ;;  %v439_v31 = vrot.slane %v435_v24, 7 }
 0x28f   :  { %v454_v29 = vsel %vm104_vm0, %v450_v11, %v451_v30  ;;  %v453_v28 = vsel %vm104_vm0, %v451_v30, %v452_v26  ;;  %v442_v32 = vsel %vm85_vm1, %v438_v25, %v439_v31  ;;  %v441_v34 = vsel %vm85_vm1, %v439_v31, %v440_v23 }
 0x290   :  { %586 = vmatmul.mubr.f32.gmra.mrb[10].mxu0 %v443_v27  ;;  %1011 = vmatmul.mubr.msk.f32.vlgmr.msra.gmra.mrb[4].mxu1 %vm112_vm3, %v454_v29 }
 0x291   :  { %590 = vmatprep.mubr.f32.mxu0 %v435_v24  ;;  %1013 = vmatprep.mubr.f32.mxu1 %v453_v28 }
 0x294   :  { %807 = vmatmul.mubr.msk.f32.gmra.mrb[12].mxu0 %vm90_vm2, %v442_v32  ;;  %1014 = vmatmul.mubr.msk.f32.gmra.mrb[6].mxu1 %vm112_vm3, %v456_v33 }
 0x295   :  { %595 = vmatprep.mubr.f32.mxu0 %v436_v20 }
 0x298   :  { %596 = vmatmul.mubr.f32.gmra.mrb[14].mxu0 %v441_v34 }
 0x35f   :  { %v908_v35 = vpop.f32.mrb[8].mxu0 }
 0x360   :  { %v909_v37 = vpop.f32.mrb[9].mxu0 }
 0x361   :  { %v910_v39 = vadd.f32 %v909_v37, %v908_v35 }
 0x363   :  { %v911_v40 = vpop.f32.mrb[10].mxu0  ;;  %v1012_v41 = vpop.f32.mrb[4].mxu1  ;;  %v583_v42 = vadd.f32 %v910_v39, %v805_v38 }
 0x364   :  { %v912_v43 = vpop.f32.mrb[11].mxu0  ;;  %v667_v44 = vpop.f32.mrb[5].mxu1 }
 0x365   :  { %v913_v45 = vadd.f32 %v912_v43, %v911_v40  ;;  %v668_v19 = vadd.f32 %v667_v44, %v583_v42 }
 0x367   :  { %v588_v47 = vadd.f32 %v913_v45, %v805_v38  ;;  %v690_v48 = vmul.f32 0.70710677, %v668_v19  ;;  %v914_v49 = vpop.f32.mrb[12].mxu0  ;;  %v1015_v46 = vpop.f32.mrb[6].mxu1  ;;  %v686_v1 = vmul.f32 0.5, %v668_v19 }
 0x368   :  { %v915_v50 = vpop.f32.mrb[13].mxu0  ;;  %v677_v51 = vpop.f32.mrb[7].mxu1 }
 0x369   :  { %v673_v52 = vadd.f32 %v1012_v41, %v588_v47  ;;  %1166 = verf.f32 %v690_v48  ;;  %v916_v53 = vadd.f32 %v915_v50, %v914_v49 }
 0x36b   :  { %v691_v54 = vmul.f32 0.70710677, %v673_v52  ;;  %v593_v55 = vadd.f32 %v916_v53, %v805_v38  ;;  %v917_v56 = vpop.f32.mrb[14].mxu0  ;;  %v687_v5 = vmul.f32 0.5, %v673_v52 }
 0x36c   :  { %v918_v57 = vpop.f32.mrb[15].mxu0 }
 0x36d   :  { %v678_v58 = vadd.f32 %v677_v51, %v593_v55  ;;  %v919_v59 = vadd.f32 %v918_v57, %v917_v56  ;;  %1168 = verf.f32 %v691_v54  ;;  %v811_v51 = vld [vmem:[%s1537_s8] ss:$0 sm:$0xff]  ;;  %s1248_s8 = scalar_lea.vmem %s786_s1, 512 }
 0x36e   :  { %p1249_p10 = scmp.ne.s32.totalorder %s786_s1, %s1248_s8  ;;  %p1254_p12 = scmp.lt.s32.totalorder %s1248_s8, %s1248_s8 }
 0x36f   :  { %v692_v60 = vmul.f32 0.70710677, %v678_v58  ;;  %v598_v61 = vadd.f32 %v919_v59, %v805_v38  ;;  %v688_v9 = vmul.f32 0.5, %v678_v58 }
 0x370   :  { %p1255_p13 = por %p1254_p12, %p1253_p11 }
 0x371   :  { %1170 = verf.f32 %v692_v60  ;;  %v683_v62 = vadd.f32 %v1015_v46, %v598_v61 }
 0x372   :  { %p1256_p0 = pnand %p1255_p13, %p1249_p10 }
 0x373   :  { %v1167_v63 = vpop.eup %1166  ;;  %v693_v0 = vmul.f32 0.70710677, %v683_v62  ;;  %v689_v17 = vmul.f32 0.5, %v683_v62 }
 0x374   :  { %v698_v2 = vadd.f32 1.0, %v1167_v63 }
 0x375   :  { %1172 = verf.f32 %v693_v0 }
 0x376   :  { %v702_v3 = vmul.f32 %v698_v2, %v686_v1 }
 0x377   :  { %v1169_v4 = vpop.eup %1168 }
 0x378   :  { %708 = vadd.xlane.f32.xlu0 %v702_v3  ;;  %v699_v6 = vadd.f32 1.0, %v1169_v4 }
 0x37a   :  { %v703_v7 = vmul.f32 %v699_v6, %v687_v5 }
 0x37b   :  { %v1171_v8 = vpop.eup %1170 }
 0x37c   :  { %710 = vadd.xlane.f32.xlu1 %v703_v7  ;;  %v700_v10 = vadd.f32 1.0, %v1171_v8 }
 0x37e   :  { %v704_v11 = vmul.f32 %v700_v10, %v688_v9 }
 0x37f   :  { %v1173_v12 = vpop.eup %1172 }
 0x380   :  { %712 = vadd.xlane.f32.xlu0 %v704_v11  ;;  %v701_v13 = vadd.f32 1.0, %v1173_v12 }
 0x382   :  { %v705_v15 = vmul.f32 %v701_v13, %v689_v17 }
 0x384   :  { %714 = vadd.xlane.f32.xlu1 %v705_v15 }
 0x405   :  { %v709_v16 = vpop.xlane.xlu0 %708 }
 0x406   :  { %v716_v18 = vmul.f32 0.03125, %v709_v16 }
 0x408   :  { %v720_v20 = vsub.f32 %v702_v3, %v716_v18 }
 0x409   :  { %v711_v22 = vpop.xlane.xlu1 %710 }
 0x40a   :  { %v717_v21 = vmul.f32 0.03125, %v711_v22  ;;  %v724_v23 = vmul.f32 %v720_v20, %v720_v20 }
 0x40c   :  { %v721_v24 = vsub.f32 %v703_v7, %v717_v21  ;;  %v728_v36 = vsel %vm384_vm4, %v724_v23, 0.0 }
 0x40d   :  { %732 = vadd.xlane.f32.xlu0 %v728_v36  ;;  %v713_v25 = vpop.xlane.xlu0 %712 }
 0x40e   :  { %v718_v30 = vmul.f32 0.03125, %v713_v25  ;;  %v725_v26 = vmul.f32 %v721_v24, %v721_v24 }
 0x410   :  { %v722_v27 = vsub.f32 %v704_v11, %v718_v30  ;;  %v729_v29 = vsel %vm384_vm4, %v725_v26, 0.0 }
 0x411   :  { %734 = vadd.xlane.f32.xlu1 %v729_v29  ;;  %v715_v28 = vpop.xlane.xlu1 %714 }
 0x412   :  { %v719_v31 = vmul.f32 0.03125, %v715_v28  ;;  %v726_v32 = vmul.f32 %v722_v27, %v722_v27 }
 0x414   :  { %v723_v33 = vsub.f32 %v705_v15, %v719_v31  ;;  %v730_v34 = vsel %vm384_vm4, %v726_v32, 0.0 }
 0x415   :  { %736 = vadd.xlane.f32.xlu0 %v730_v34 }
 0x416   :  { %v727_v35 = vmul.f32 %v723_v33, %v723_v33 }
 0x418   :  { %v731_v37 = vsel %vm384_vm4, %v727_v35, 0.0 }
 0x419   :  { %738 = vadd.xlane.f32.xlu1 %v731_v37 }
 0x49a   :  { %v733_v38 = vpop.xlane.xlu0 %732 }
 0x49b   :  { %v740_v39 = vmul.f32 0.03125, %v733_v38 }
 0x49d   :  { %v744_v40 = vadd.f32 1e-05, %v740_v39 }
 0x49e   :  { %v735_v41 = vpop.xlane.xlu1 %734 }
 0x49f   :  { %1174 = vrsqrt.f32 %v744_v40  ;;  %v741_v42 = vmul.f32 0.03125, %v735_v41 }
 0x4a1   :  { %v745_v43 = vadd.f32 1e-05, %v741_v42 }
 0x4a2   :  { %v737_v44 = vpop.xlane.xlu0 %736 }
 0x4a3   :  { %1176 = vrsqrt.f32 %v745_v43  ;;  %v742_v45 = vmul.f32 0.03125, %v737_v44 }
 0x4a5   :  { %v746_v19 = vadd.f32 1e-05, %v742_v45 }
 0x4a6   :  { %v739_v47 = vpop.xlane.xlu1 %738 }
 0x4a7   :  { %1178 = vrsqrt.f32 %v746_v19  ;;  %v743_v48 = vmul.f32 0.03125, %v739_v47 }
 0x4a9   :  { %v1175_v49 = vpop.eup %1174  ;;  %v747_v46 = vadd.f32 1e-05, %v743_v48 }
 0x4aa   :  { %v752_v50 = vmul.f32 %v1175_v49, %v720_v20 }
 0x4ab   :  { %1180 = vrsqrt.f32 %v747_v46 }
 0x4ac   :  { %v762_v52 = vmul.f32 %v810_v14, %v752_v50 }
 0x4ad   :  { %v1177_v53 = vpop.eup %1176 }
 0x4ae   :  { %v753_v54 = vmul.f32 %v1177_v53, %v721_v24  ;;  %v772_v55 = vadd.f32 %v811_v51, %v762_v52 }
 0x4b0   :  { %v763_v56 = vmul.f32 %v810_v14, %v753_v54  ;;  %776 = vst [vmem:[#allocation8] sm:$0xff] %v772_v55 }
 0x4b1   :  { %v1179_v57 = vpop.eup %1178 }
 0x4b2   :  { %v754_v58 = vmul.f32 %v1179_v57, %v722_v27  ;;  %v773_v59 = vadd.f32 %v811_v51, %v763_v56 }
 0x4b4   :  { %v764_v60 = vmul.f32 %v810_v14, %v754_v58  ;;  %777 = vst [vmem:[#allocation8 + $0x8] sm:$0xff] %v773_v59 }
 0x4b5   :  { %v1181_v61 = vpop.eup %1180 }
 0x4b6   :  { %v755_v62 = vmul.f32 %v1181_v61, %v723_v33  ;;  %v774_v63 = vadd.f32 %v811_v51, %v764_v60 }
 0x4b8   :  { %v765_v0 = vmul.f32 %v810_v14, %v755_v62  ;;  %778 = vst [vmem:[#allocation8 + $0x10] sm:$0xff] %v774_v63 }
 0x4ba   :  { %v775_v1 = vadd.f32 %v811_v51, %v765_v0 }
 0x4bc   :  { %779 = vst [vmem:[#allocation8 + $0x18] sm:$0xff] %v775_v1 }
 0x4bd   :  { %1259 = shalt.err (!%p1256_p0)
}
 0x4be   :  { %s1260_s15 = scalar_lea.hbm %s1538_s9, 512 }
 0x4bf   :  { %p1261_p1 = scmp.ne.s32.totalorder %s1538_s9, %s1260_s15  ;;  %p1264_p2 = scmp.lt.u32.totalorder %s1260_s15, %s1538_s9 }
 0x4c1   :  { %p1266_p3 = pnand %p1264_p2, %p1261_p1 }
 0x4c3   :  { %1269 = shalt.err (!%p1266_p3)
}
 0x4c4   :  { %791 = dma.vmem_to_hbm [thread:$0]  %s786_s1, 512, %s1538_s9, [#allocation4], %s1278_s21, %s1278_s21, %s1279_s22  }
 0x4c5   :  { %1274 = dma.done.wait [#allocation4], 512  }
 0x4c6   :  { %1275 = vsyncadd [#allocation4], 4294966784 }
 0x4c7   :  { %795 = vsyncpa [#allocation3], 1 }
 0x4c8   :  { %796 = vsyncpa [#allocation6], 1 }
 0x4c9   :  { %797 = vsyncpa [#allocation4], 1 }

</bundles_post_ra>
